<compile_context>
chip_gen: v7x
topology: tpu7x:2x2x1
jax: 0.10.0
libtpu: 0.0.40
codegen_flags: <defaults>
</compile_context>

<pallas_src>
import jax
import jax.numpy as jnp
from jax.experimental import pallas as pl
from jax.experimental.pallas import tpu as pltpu


def _round_up(x, m):
    return (x + m - 1) // m * m


def mlp_kernel(x_ref, w1t_ref, w2t_ref, w3t_ref, vec_ref, o_ref):
    # Feature-major: x_ref (n_in, block_b), o_ref (n_out, block_b).
    # vec_ref columns: 0=b1, 1=b2, 2=0.5*b3, 3=half_range, 4=mid(=neg_lim+half_range)
    n_hidden, n_in = w1t_ref.shape
    n_out = o_ref.shape[0]

    b1 = vec_ref[0:n_hidden, 0:1]          # (n_hidden, 1), broadcasts over lanes
    b2 = vec_ref[0:n_hidden, 1:2]
    b3h = vec_ref[0:n_out, 2:3]
    half_range = vec_ref[0:n_out, 3:4]
    mid = vec_ref[0:n_out, 4:5]

    x = x_ref[...]                         # (n_in, block_b)

    # ---- layer 1: K == n_in is tiny -> rank-1 broadcast-FMAs on the VPU, no MXU.
    # input_scale is already folded into w1t, so no divide here.
    if n_in <= 8:
        h = b1
        for i in range(n_in):              # static unroll
            h = h + w1t_ref[0:n_hidden, i:i + 1] * x[i:i + 1, :]
    else:
        h = jnp.dot(w1t_ref[...], x, preferred_element_type=jnp.float32) + b1
    h = jnp.maximum(h, 0.0)

    # ---- hidden layer: (n_hidden, n_hidden) @ (n_hidden, block_b) on the MXU.
    h = jnp.dot(w2t_ref[...], h, preferred_element_type=jnp.float32)
    h = jnp.maximum(h + b2, 0.0)

    # ---- output layer: the 0.5 is folded into w3t/b3, so y == 0.5*(W3^T h + b3)
    y = jnp.dot(w3t_ref[...], h, preferred_element_type=jnp.float32) + b3h

    # sigmoid(z)*range + neg_lim == half_range*tanh(z/2) + (neg_lim + half_range)
    o_ref[...] = jnp.tanh(y) * half_range + mid


def _default_block_b(B):
    # Small batches: one lane-dense tile covering the whole (padded) batch.
    if B <= 2048:
        return _round_up(max(B, 1), 128)
    # Large batches: big tiles to amortize the ~0.35us per-grid-step cost, but
    # keep >=2 grid steps so v7x's two TensorCores both get work.  Feature-major
    # VMEM footprint at 8192 lanes is only a few MiB -> safe on v5e/v6e/v7x.
    half = _round_up(-(-B // 2), 128)
    return min(8192, half)


def mlp_forward(x, kp, *, block_b=None):
    """x: (B, n_input) f32.  kp: dict from prepare_kernel_params.  Returns (B, n_output)."""
    B, n_in = x.shape
    n_hidden = kp["w2t"].shape[0]
    n_out = kp["w3t"].shape[0]

    if block_b is None:
        block_b = _default_block_b(B)
    block_b = _round_up(max(block_b, 128), 128)     # lane-dense batch tile

    b_pad = _round_up(B, block_b)
    grid = (b_pad // block_b,)

    # Wrapper-side layout plumbing: batch goes on the lane (last) axis.
    xt = x.T                                         # (n_in, B)
    if b_pad != B:
        xt = jnp.pad(xt, ((0, 0), (0, b_pad - B)))

    out_t = pl.pallas_call(
        mlp_kernel,
        out_shape=jax.ShapeDtypeStruct((n_out, b_pad), jnp.float32),
        grid=grid,
        in_specs=[
            pl.BlockSpec((n_in, block_b), lambda i: (0, i)),       # x tile (batch on lanes)
            pl.BlockSpec((n_hidden, n_in), lambda i: (0, 0)),      # w1t (resident, scale folded)
            pl.BlockSpec((n_hidden, n_hidden), lambda i: (0, 0)),  # w2t (resident)
            pl.BlockSpec((n_out, n_hidden), lambda i: (0, 0)),     # w3t (resident, 0.5 folded)
            pl.BlockSpec(kp["vec"].shape, lambda i: (0, 0)),       # packed bias/range columns
        ],
        out_specs=pl.BlockSpec((n_out, block_b), lambda i: (0, i)),
        compiler_params=pltpu.CompilerParams(
            dimension_semantics=("parallel",),        # shards batch across TCs on v7x
            vmem_limit_bytes=32 * 1024 * 1024,        # explicit; usage is a few MiB at most
        ),
    )(xt, kp["w1t"], kp["w2t"], kp["w3t"], kp["vec"])

    return out_t[:, :B].T


def make_raw_params(key, n_input, n_hidden, n_output, neg_lim, pos_lim):
    """Deterministic synthetic parameters (PyTorch Linear shapes, stored transposed)."""
    ks = jax.random.split(key, 6)

    def uni(k, shape, fan_in):
        bound = 1.0 / jnp.sqrt(jnp.float32(fan_in))
        return jax.random.uniform(k, shape, jnp.float32, -bound, bound)

    return {
        "w1": uni(ks[0], (n_input, n_hidden), n_input),    # l1.weight.T
        "b1": uni(ks[1], (n_hidden,), n_input),            # l1.bias
        "w2": uni(ks[2], (n_hidden, n_hidden), n_hidden),  # lh.weight.T
        "b2": uni(ks[3], (n_hidden,), n_hidden),           # lh.bias
        "w3": uni(ks[4], (n_hidden, n_output), n_hidden),  # lout.weight.T
        "b3": uni(ks[5], (n_output,), n_hidden),           # lout.bias
        "neg_lim": jnp.asarray(neg_lim, jnp.float32),
        "pos_lim": jnp.asarray(pos_lim, jnp.float32),
        "input_scale": jnp.array([0.3, 50.0], jnp.float32),
    }


def prepare_kernel_params(p):
    """Fold input_scale into w1, the tanh half into w3/b3, transpose everything to
    feature-major, and pack the small per-feature vectors into one resident tile
    (as columns so they broadcast over the lane/batch axis in-kernel)."""
    n_input, n_hidden = p["w1"].shape
    n_output = p["w3"].shape[1]

    rng = p["pos_lim"] - p["neg_lim"]
    half_range = 0.5 * rng
    mid = p["neg_lim"] + half_range

    vec_rows = _round_up(max(n_hidden, n_output, 8), 8)
    vec = jnp.zeros((vec_rows, 128), jnp.float32)
    vec = vec.at[:n_hidden, 0].set(p["b1"])
    vec = vec.at[:n_hidden, 1].set(p["b2"])
    vec = vec.at[:n_output, 2].set(0.5 * p["b3"])
    vec = vec.at[:n_output, 3].set(half_range)
    vec = vec.at[:n_output, 4].set(mid)

    return {
        "w1t": (p["w1"] / p["input_scale"][:, None]).T,   # (n_hidden, n_input), scale folded
        "w2t": p["w2"].T,                                 # (n_hidden, n_hidden)
        "w3t": (0.5 * p["w3"]).T,                         # (n_output, n_hidden), tanh half folded
        "vec": vec,
    }


def mlp_reference(x, p):
    """Pure-JAX reference matching the PyTorch forward (unfolded, row-major form)."""
    xs = x / p["input_scale"][None, :]
    h = jnp.maximum(xs @ p["w1"] + p["b1"][None, :], 0.0)
    h = jnp.maximum(h @ p["w2"] + p["b2"][None, :], 0.0)
    y = h @ p["w3"] + p["b3"][None, :]
    rng = p["pos_lim"] - p["neg_lim"]
    return jax.nn.sigmoid(y) * rng[None, :] + p["neg_lim"][None, :]


# TODO(synk): the autograd helpers (time_derivative, jacobian, ...) are not part
# of the forward pass; use jax.jvp / jax.jacfwd on mlp_forward if needed.

if __name__ == "__main__":
    # Module implies n_input = 2 (input_scale has 2 entries).
    n_input, n_hidden, n_output = 2, 32, 2
    neg_lim = [-1.0, -2.0]
    pos_lim = [1.0, 3.0]

    key = jax.random.PRNGKey(0)
    kx, kparam, kx2 = jax.random.split(key, 3)
    raw = make_raw_params(kparam, n_input, n_hidden, n_output, neg_lim, pos_lim)
    kparams = prepare_kernel_params(raw)

    # Small batch: single lane-dense tile (padded to 128 lanes).
    x = jax.random.normal(kx, (8, n_input), jnp.float32)
    out = jax.block_until_ready(mlp_forward(x, kparams))
    ref = mlp_reference(x, raw)
    assert out.shape == (8, n_output)
    assert jnp.allclose(out, ref, atol=1e-5, rtol=1e-4), float(jnp.max(jnp.abs(out - ref)))

    # Ragged batch not divisible by the tile: exercises cdiv/padding + a 2-step grid.
    x2 = jax.random.normal(kx2, (300, n_input), jnp.float32)
    out2 = jax.block_until_ready(mlp_forward(x2, kparams, block_b=256))
    ref2 = mlp_reference(x2, raw)
    assert out2.shape == (300, n_output)
    assert jnp.allclose(out2, ref2, atol=1e-5, rtol=1e-4), float(jnp.max(jnp.abs(out2 - ref2)))

    print("KERNEL_OK")
</pallas_src>

<mosaic_0001>
module attributes {stable_mosaic.version = 11 : i64} {
  func.func @mlp_kernel(%arg0: i32, %arg1: memref<2x128xf32, #tpu.memory_space<vmem>>, %arg2: memref<32x2xf32, #tpu.memory_space<vmem>>, %arg3: memref<32x32xf32, #tpu.memory_space<vmem>>, %arg4: memref<2x32xf32, #tpu.memory_space<vmem>>, %arg5: memref<32x128xf32, #tpu.memory_space<vmem>>, %arg6: memref<2x128xf32, #tpu.memory_space<vmem>>) attributes {dimension_semantics = [#tpu.dimension_semantics<parallel>], iteration_bounds = array<i64: 1>, scalar_prefetch = 0 : i64, scratch_operands = 0 : i64, tpu.core_type = #tpu.core_type<tc>, window_params = [{transform_indices = @transform_0, window_bounds = array<i64: 2, 128>}, {pipeline_mode = #tpu.pipeline_mode<synchronous>, transform_indices = @transform_1, window_bounds = array<i64: 32, 2>}, {pipeline_mode = #tpu.pipeline_mode<synchronous>, transform_indices = @transform_2, window_bounds = array<i64: 32, 32>}, {pipeline_mode = #tpu.pipeline_mode<synchronous>, transform_indices = @transform_3, window_bounds = array<i64: 2, 32>}, {pipeline_mode = #tpu.pipeline_mode<synchronous>, transform_indices = @transform_4, window_bounds = array<i64: 32, 128>}, {transform_indices = @transform_5, window_bounds = array<i64: 2, 128>}]} {
    %c0 = arith.constant 0 : index
    %c0_0 = arith.constant 0 : index
    %0 = vector.load %arg5[%c0, %c0_0] : memref<32x128xf32, #tpu.memory_space<vmem>>, vector<32x1xf32>
    %c0_1 = arith.constant 0 : index
    %c1 = arith.constant 1 : index
    %1 = vector.load %arg5[%c0_1, %c1] : memref<32x128xf32, #tpu.memory_space<vmem>>, vector<32x1xf32>
    %c0_2 = arith.constant 0 : index
    %c2 = arith.constant 2 : index
    %2 = vector.load %arg5[%c0_2, %c2] : memref<32x128xf32, #tpu.memory_space<vmem>>, vector<2x1xf32>
    %c0_3 = arith.constant 0 : index
    %c3 = arith.constant 3 : index
    %3 = vector.load %arg5[%c0_3, %c3] : memref<32x128xf32, #tpu.memory_space<vmem>>, vector<2x1xf32>
    %c0_4 = arith.constant 0 : index
    %c4 = arith.constant 4 : index
    %4 = vector.load %arg5[%c0_4, %c4] : memref<32x128xf32, #tpu.memory_space<vmem>>, vector<2x1xf32>
    %c0_5 = arith.constant 0 : index
    %c0_6 = arith.constant 0 : index
    %5 = vector.load %arg1[%c0_5, %c0_6] : memref<2x128xf32, #tpu.memory_space<vmem>>, vector<2x128xf32>
    %c0_7 = arith.constant 0 : index
    %c0_8 = arith.constant 0 : index
    %6 = vector.load %arg2[%c0_7, %c0_8] : memref<32x2xf32, #tpu.memory_space<vmem>>, vector<32x1xf32>
    %7 = vector.extract_strided_slice %5 {offsets = [0, 0], sizes = [1, 128], strides = [1, 1]} : vector<2x128xf32> to vector<1x128xf32>
    %8 = vector.broadcast %6 : vector<32x1xf32> to vector<32x128xf32>
    %9 = vector.broadcast %7 : vector<1x128xf32> to vector<32x128xf32>
    %10 = arith.mulf %8, %9 : vector<32x128xf32>
    %11 = vector.broadcast %0 : vector<32x1xf32> to vector<32x128xf32>
    %12 = arith.addf %11, %10 : vector<32x128xf32>
    %c0_9 = arith.constant 0 : index
    %c1_10 = arith.constant 1 : index
    %13 = vector.load %arg2[%c0_9, %c1_10] : memref<32x2xf32, #tpu.memory_space<vmem>>, vector<32x1xf32>
    %14 = vector.extract_strided_slice %5 {offsets = [1, 0], sizes = [1, 128], strides = [1, 1]} : vector<2x128xf32> to vector<1x128xf32>
    %15 = vector.broadcast %13 : vector<32x1xf32> to vector<32x128xf32>
    %16 = vector.broadcast %14 : vector<1x128xf32> to vector<32x128xf32>
    %17 = arith.mulf %15, %16 : vector<32x128xf32>
    %18 = arith.addf %12, %17 : vector<32x128xf32>
    %cst = arith.constant 0.000000e+00 : f32
    %19 = vector.broadcast %cst : f32 to vector<32x128xf32>
    %20 = arith.maximumf %18, %19 : vector<32x128xf32>
    %c0_11 = arith.constant 0 : index
    %c0_12 = arith.constant 0 : index
    %21 = vector.load %arg3[%c0_11, %c0_12] : memref<32x32xf32, #tpu.memory_space<vmem>>, vector<32x32xf32>
    %cst_13 = arith.constant dense<0.000000e+00> : vector<32x128xf32>
    %22 = tpu.matmul %21, %20, %cst_13 {dimension_numbers = #tpu.dot_dimension_numbers<[1], [0], [0], [1], [0, 0, 1, 1], [], []>} : vector<32x32xf32>, vector<32x128xf32>, vector<32x128xf32> -> vector<32x128xf32>
    %23 = vector.broadcast %1 : vector<32x1xf32> to vector<32x128xf32>
    %24 = arith.addf %22, %23 : vector<32x128xf32>
    %cst_14 = arith.constant 0.000000e+00 : f32
    %25 = vector.broadcast %cst_14 : f32 to vector<32x128xf32>
    %26 = arith.maximumf %24, %25 : vector<32x128xf32>
    %c0_15 = arith.constant 0 : index
    %c0_16 = arith.constant 0 : index
    %27 = vector.load %arg4[%c0_15, %c0_16] : memref<2x32xf32, #tpu.memory_space<vmem>>, vector<2x32xf32>
    %cst_17 = arith.constant dense<0.000000e+00> : vector<2x128xf32>
    %28 = tpu.matmul %27, %26, %cst_17 {dimension_numbers = #tpu.dot_dimension_numbers<[1], [0], [0], [1], [0, 0, 1, 1], [], []>} : vector<2x32xf32>, vector<32x128xf32>, vector<2x128xf32> -> vector<2x128xf32>
    %29 = vector.broadcast %2 : vector<2x1xf32> to vector<2x128xf32>
    %30 = arith.addf %28, %29 : vector<2x128xf32>
    %31 = math.tanh %30 : vector<2x128xf32>
    %32 = vector.broadcast %3 : vector<2x1xf32> to vector<2x128xf32>
    %33 = arith.mulf %31, %32 : vector<2x128xf32>
    %34 = vector.broadcast %4 : vector<2x1xf32> to vector<2x128xf32>
    %35 = arith.addf %33, %34 : vector<2x128xf32>
    %c0_18 = arith.constant 0 : index
    %c0_19 = arith.constant 0 : index
    %36 = vector.load %arg6[%c0_18, %c0_19] : memref<2x128xf32, #tpu.memory_space<vmem>>, vector<2x128xf32>
    tpu.vector_store %arg6[%c0_18, %c0_19], %35 {strides = array<i32>} : memref<2x128xf32, #tpu.memory_space<vmem>>, vector<2x128xf32>,
    return
  }
  func.func @transform_0(%arg0: i32) -> (i32, i32) {
    %c0_i32 = arith.constant 0 : i32
    %c0_i32_0 = arith.constant 0 : i32
    return %c0_i32, %arg0 : i32, i32
  }
  func.func @transform_1(%arg0: i32) -> (i32, i32) {
    %c0_i32 = arith.constant 0 : i32
    %c0_i32_0 = arith.constant 0 : i32
    %c0_i32_1 = arith.constant 0 : i32
    return %c0_i32, %c0_i32_0 : i32, i32
  }
  func.func @transform_2(%arg0: i32) -> (i32, i32) {
    %c0_i32 = arith.constant 0 : i32
    %c0_i32_0 = arith.constant 0 : i32
    %c0_i32_1 = arith.constant 0 : i32
    return %c0_i32, %c0_i32_0 : i32, i32
  }
  func.func @transform_3(%arg0: i32) -> (i32, i32) {
    %c0_i32 = arith.constant 0 : i32
    %c0_i32_0 = arith.constant 0 : i32
    %c0_i32_1 = arith.constant 0 : i32
    return %c0_i32, %c0_i32_0 : i32, i32
  }
  func.func @transform_4(%arg0: i32) -> (i32, i32) {
    %c0_i32 = arith.constant 0 : i32
    %c0_i32_0 = arith.constant 0 : i32
    %c0_i32_1 = arith.constant 0 : i32
    return %c0_i32, %c0_i32_0 : i32, i32
  }
  func.func @transform_5(%arg0: i32) -> (i32, i32) {
    %c0_i32 = arith.constant 0 : i32
    %c0_i32_0 = arith.constant 0 : i32
    return %c0_i32, %arg0 : i32, i32
  }
}

</mosaic_0001>

<bundles_post_ra>
// kernel: tpu_custom_call.1
= control target key start
LH: loop header
LB: loop body
LE: loop exit
PB: predicated region body
PF: predicated region fallthrough
CT: control target
= control target key end

     0   :  { %10 = vsyncpa [#allocation3], 0  ;;  %s587_s0 = inlined_call_operand.vmem [shape: f32[2,128], index: 0, kind: input, shape index: {}]   ;;  %s588_s1 = inlined_call_operand.vmem [shape: f32[32,2], index: 1, kind: input, shape index: {}]   ;;  %s589_s2 = inlined_call_operand.vmem [shape: f32[32,32], index: 2, kind: input, shape index: {}]   ;;  %s590_s3 = inlined_call_operand.vmem [shape: f32[2,32], index: 3, kind: input, shape index: {}]   ;;  %s591_s4 = inlined_call_operand.hbm [shape: f32[32,128], index: 4, kind: input, shape index: {}]   ;;  %s592_s5 = inlined_call_operand.hbm [shape: f32[2,128], index: 5, kind: output, shape index: {}]  }
   0x1   :  { %11 = vsyncpa [#allocation4], 0  ;;  %s486_s18 = smov [#allocation2]   ;;  %s438_s22 = scalar_lea.hbm %s591_s4, 512 }
   0x2   :  { %s25_s19 = sshll.u32 %s486_s18, 4  ;;  %p439_p0 = scmp.ne.s32.totalorder %s591_s4, %s438_s22  ;;  %s26_s19 = int_to_ptr.vmem [resolvable:$true] %s25_s19 }
   0x3   :  { %p442_p1 = scmp.lt.u32.totalorder %s438_s22, %s591_s4 }
   0x5   :  { %p444_p2 = pnand %p442_p1, %p439_p0 }
   0x7   :  { %447 = shalt.err (!%p444_p2)
}
   0x8   :  { %s448_s27 = scalar_lea.vmem %s26_s19, 512  ;;  %p453_p4 = scmp.lt.s32.totalorder %s26_s19, %s26_s19 }
   0x9   :  { %p449_p3 = scmp.ne.s32.totalorder %s26_s19, %s448_s27  ;;  %p454_p5 = scmp.lt.s32.totalorder %s448_s27, %s448_s27 }
   0xb   :  { %p455_p6 = por %p454_p5, %p453_p4 }
   0xd   :  { %p456_p7 = pnand %p455_p6, %p449_p3 }
   0xf   :  { %459 = shalt.err (!%p456_p7)
}
  0x10   :  { %s487_s28 = smov 128   ;;  %s488_s29 = smov 8  }
  0x11   :  { %31 = dma.hbm_to_vmem [thread:$0]  %s591_s4, 512, %s26_s19, [#allocation3], %s487_s28, %s487_s28, %s488_s29  }
  0x12   :  { %482 = dma.done.wait [#allocation3], 512  }
  0x13   :  { %483 = vsyncadd [#allocation3], 4294966784  ;;  %v489_v0 = vmov 0   ;;  %v41_v1 = vld [vmem:[%s588_s1] sm:$0xff]  ;;  %v42_v3 = vld [vmem:[%s588_s1 + $0x8] sm:$0xff]  ;;  %v490_v6 = vmov 1   ;;  %v65_v11 = vlaneseq }
  0x14   :  { %427 = vset.pattern.permute.xlu1 %v489_v0  ;;  %426 = vset.pattern.permute.xlu0 %v489_v0  ;;  %v35_v2 = vld [vmem:[#allocation2] sm:$0xff]  ;;  %v36_v4 = vld [vmem:[#allocation2 + $0x8] sm:$0xff]  ;;  %v44_v5 = vld [vmem:[%s588_s1 + $0x18] sm:$0xff]  ;;  %vm149_vm0 = vcmask 261120   ;;  %v491_v55 = vmov 0.0|0.0   ;;  %vm492_vm1 = vmmov 0  }
  0x15   :  { %47 = vperm.xlu0 %426, %v41_v1   ;;  %75 = vperm.xlu1 %427, %v35_v2   ;;  %v43_v7 = vld [vmem:[%s588_s1 + $0x10] sm:$0xff]  ;;  %v38_v9 = vld [vmem:[#allocation2 + $0x18] sm:$0xff]  ;;  %v129_v10 = vld [vmem:[%s589_s2] sm:$0xff]  ;;  %v66_v12 = vshrl.u32 %v65_v11, 7  ;;  %v493_v56 = vmov 0.0   ;;  %v494_v58 = vmov 2  }
  0x16   :  { %v37_v8 = vld [vmem:[#allocation2 + $0x10] sm:$0xff]  ;;  %383 = vmatprep.mubr.msk.f32.mxu0 %vm149_vm0, %v129_v10  ;;  %v40_v17 = vld [vmem:[%s587_s0] sm:$0x3]  ;;  %v130_v52 = vld [vmem:[%s589_s2 + $0x8] sm:$0xff]  ;;  %408 = vmatprep.subr.bf16.mxu1 %v491_v55  ;;  %v495_v59 = vmov 3   ;;  %v496_v60 = vmov 4  }
  0x17   :  { %v67_v15 = vsub.s32 0, %v66_v12  ;;  %v115_v16 = vsub.s32 1, %v66_v12  ;;  %v131_v53 = vld [vmem:[%s589_s2 + $0x10] sm:$0xff]  ;;  %v132_v54 = vld [vmem:[%s589_s2 + $0x18] sm:$0xff]  ;;  %397 = vmatprep.mubr.msk.f32.mxu1 %vm492_vm1, %v493_v56  ;;  %v39_v57 = vld [vmem:[#allocation2] sm:$0x3] }
  0x18   :  { %s497_s23 = smov [#allocation5]  }
  0x19   :  { %52 = vperm.xlu0 %426, %v42_v3   ;;  %80 = vperm.xlu1 %427, %v36_v4   ;;  %v68_v20 = vrot.slane %v40_v17, %v67_v15  ;;  %v116_v21 = vrot.slane %v40_v17, %v115_v16  ;;  %v251_v15 = vld [vmem:[%s590_s3] sm:$0x3]  ;;  %s348_s24 = sshll.u32 %s497_s23, 4  ;;  %s349_s24 = int_to_ptr.vmem [resolvable:$true] %s348_s24 }
  0x1a   :  { %s460_s25 = scalar_lea.vmem %s349_s24, 32  ;;  %p465_p9 = scmp.lt.s32.totalorder %s349_s24, %s349_s24 }
  0x1b   :  { %p461_p8 = scmp.ne.s32.totalorder %s349_s24, %s460_s25  ;;  %p466_p10 = scmp.lt.s32.totalorder %s460_s25, %s460_s25 }
  0x1d   :  { %62 = vperm.xlu0 %426, %v44_v5   ;;  %428 = vset.pattern.permute.xlu1 %v490_v6  ;;  %p467_p11 = por %p466_p10, %p465_p9 }
  0x1e   :  { %102 = vperm.xlu1 %428, %v42_v3  }
  0x1f   :  { %p468_p12 = pnand %p467_p11, %p461_p8 }
  0x21   :  { %430 = vset.pattern.permute.xlu0 %v490_v6 }
  0x22   :  { %98 = vperm.xlu0 %430, %v41_v1   ;;  %429 = vset.pattern.permute.xlu1 %v489_v0 }
  0x23   :  { %57 = vperm.xlu1 %429, %v43_v7  }
  0x26   :  { %106 = vperm.xlu0 %430, %v43_v7  }
  0x27   :  { %85 = vperm.xlu1 %429, %v37_v8  }
  0x2a   :  { %138 = vperm.xlu0 %430, %v36_v4  }
  0x2b   :  { %90 = vperm.xlu1 %429, %v38_v9  }
  0x2e   :  { %146 = vperm.xlu0 %430, %v38_v9  }
  0x2f   :  { %431 = vset.pattern.permute.xlu1 %v490_v6 }
  0x30   :  { %110 = vperm.xlu1 %431, %v44_v5  }
  0x32   :  { %433 = vset.pattern.permute.xlu0 %v495_v59 }
  0x33   :  { %332 = vperm.xlu0 %433, %v39_v57  }
  0x34   :  { %134 = vperm.xlu1 %431, %v35_v2  }
  0x37   :  { %435 = vset.pattern.permute.xlu0 %v496_v60 }
  0x38   :  { %142 = vperm.xlu1 %431, %v37_v8  }
  0x3c   :  { %432 = vset.pattern.permute.xlu1 %v494_v58 }
  0x3d   :  { %254 = vperm.xlu1 %432, %v39_v57  }
  0x41   :  { %434 = vset.pattern.permute.xlu1 %v496_v60 }
  0x42   :  { %337 = vperm.xlu1 %434, %v39_v57  }
  0x94   :  { %v48_v13 = vpop.permute.xlu0 %47  ;;  %v76_v14 = vpop.permute.xlu1 %75 }
  0x95   :  { %v69_v25 = vmul.f32 %v68_v20, %v48_v13 }
  0x97   :  { %v93_v29 = vadd.f32 %v76_v14, %v69_v25 }
  0x98   :  { %v53_v18 = vpop.permute.xlu0 %52  ;;  %v81_v19 = vpop.permute.xlu1 %80 }
  0x99   :  { %v70_v22 = vmul.f32 %v68_v20, %v53_v18 }
  0x9b   :  { %v94_v27 = vadd.f32 %v81_v19, %v70_v22 }
  0x9c   :  { %v63_v23 = vpop.permute.xlu0 %62 }
  0x9d   :  { %v103_v24 = vpop.permute.xlu1 %102  ;;  %v72_v43 = vmul.f32 %v68_v20, %v63_v23 }
  0x9e   :  { %v118_v26 = vmul.f32 %v116_v21, %v103_v24 }
  0xa0   :  { %v122_v30 = vadd.f32 %v118_v26, %v94_v27 }
  0xa1   :  { %v99_v28 = vpop.permute.xlu0 %98 }
  0xa2   :  { %v117_v31 = vmul.f32 %v116_v21, %v99_v28  ;;  %v58_v32 = vpop.permute.xlu1 %57  ;;  %v126_v34 = vmax.f32 %v122_v30, 0.0 }
  0xa3   :  { %v71_v39 = vmul.f32 %v68_v20, %v58_v32 }
  0xa4   :  { %v121_v33 = vadd.f32 %v117_v31, %v93_v29 }
  0xa5   :  { %v107_v38 = vpop.permute.xlu0 %106 }
  0xa6   :  { %v125_v35 = vmax.f32 %v121_v33, 0.0  ;;  %v86_v36 = vpop.permute.xlu1 %85  ;;  %v119_v41 = vmul.f32 %v116_v21, %v107_v38 }
  0xa7   :  { %v95_v42 = vadd.f32 %v86_v36, %v71_v39 }
  0xa8   :  { %v400_v37 = vpack.c.bf16 %v126_v34, %v125_v35 }
  0xa9   :  { %v123_v45 = vadd.f32 %v119_v41, %v95_v42  ;;  %v139_v61 = vpop.permute.xlu0 %138 }
  0xaa   :  { %401 = vmatprep.subr.bf16.mxu0 %v400_v37  ;;  %v91_v40 = vpop.permute.xlu1 %90 }
  0xab   :  { %403 = vmatpush3.bf16.msra.mxu0 %v400_v37  ;;  %v96_v46 = vadd.f32 %v91_v40, %v72_v43  ;;  %v127_v49 = vmax.f32 %v123_v45, 0.0 }
  0xad   :  { %v147_v4 = vpop.permute.xlu0 %146 }
  0xaf   :  { %v111_v44 = vpop.permute.xlu1 %110 }
  0xb0   :  { %v120_v47 = vmul.f32 %v116_v21, %v111_v44 }
  0xb2   :  { %v124_v48 = vadd.f32 %v120_v47, %v96_v46  ;;  %v333_v20 = vpop.permute.xlu0 %332 }
  0xb3   :  { %v135_v62 = vpop.permute.xlu1 %134 }
  0xb4   :  { %v128_v50 = vmax.f32 %v124_v48, 0.0 }
  0xb6   :  { %v404_v51 = vpack.c.bf16 %v128_v50, %v127_v49 }
  0xb7   :  { %v143_v7 = vpop.permute.xlu1 %142 }
  0xb8   :  { %405 = vmatprep.subr.bf16.mxu0 %v404_v51 }
  0xb9   :  { %407 = vmatpush3.bf16.msra.mxu0 %v404_v51 }
  0xbc   :  { %384 = vmatmul.mubr.msk.f32.vlgmr.msra.gmra.mrb[0].mxu0 %vm149_vm0, %v130_v52  ;;  %v255_v16 = vpop.permute.xlu1 %254 }
  0xbd   :  { %386 = vmatprep.mubr.msk.f32.mxu0 %vm149_vm0, %v131_v53 }
  0xc0   :  { %387 = vmatmul.mubr.msk.f32.gmra.mrb[2].mxu0 %vm149_vm0, %v132_v54 }
  0xc1   :  { %v338_v22 = vpop.permute.xlu1 %337 }
 0x18f   :  { %v385_v63 = vpop.f32.mrb[0].mxu0 }
 0x190   :  { %v234_v0 = vadd.f32 %v385_v63, %v139_v61  ;;  %v228_v1 = vpop.f32.mrb[1].mxu0 }
 0x191   :  { %v229_v2 = vadd.f32 %v228_v1, %v135_v62 }
 0x192   :  { %v248_v3 = vmax.f32 %v234_v0, 0.0 }
 0x193   :  { %v247_v5 = vmax.f32 %v229_v2, 0.0  ;;  %v388_v6 = vpop.f32.mrb[2].mxu0 }
 0x194   :  { %v244_v8 = vadd.f32 %v388_v6, %v147_v4  ;;  %v238_v9 = vpop.f32.mrb[3].mxu0 }
 0x195   :  { %v239_v10 = vadd.f32 %v238_v9, %v143_v7  ;;  %v409_v11 = vpack.c.bf16 %v248_v3, %v247_v5 }
 0x196   :  { %v250_v12 = vmax.f32 %v244_v8, 0.0 }
 0x197   :  { %v249_v13 = vmax.f32 %v239_v10, 0.0  ;;  %410 = vmatpush3.bf16.msra.mxu1 %v409_v11 }
 0x198   :  { %411 = vmatprep.subr.bf16.mxu1 %v491_v55 }
 0x199   :  { %v412_v14 = vpack.c.bf16 %v250_v12, %v249_v13 }
 0x19b   :  { %413 = vmatpush3.bf16.msra.mxu1 %v412_v14 }
 0x19e   :  { %398 = vmatmul.mubr.msk.f32.vlgmr.msra.gmra.mrb[0].mxu1 %vm149_vm0, %v251_v15 }
 0x271   :  { %v326_v17 = vpop.f32.mrb[0].mxu1 }
 0x272   :  { %v327_v18 = vadd.f32 %v326_v17, %v255_v16  ;;  %v399_v19 = vpop.f32.mrb[1].mxu1 }
 0x274   :  { %436 = vtanh.f32 %v327_v18 }
 0x27e   :  { %v437_v21 = vpop.eup %436 }
 0x27f   :  { %v335_v23 = vmul.f32 %v437_v21, %v333_v20 }
 0x281   :  { %v340_v24 = vadd.f32 %v338_v22, %v335_v23 }
 0x283   :  { %341 = vst [vmem:[#allocation5] sm:$0x3] %v340_v24 }
 0x284   :  { %471 = shalt.err (!%p468_p12)
}
 0x285   :  { %s472_s27 = scalar_lea.hbm %s592_s5, 32 }
 0x286   :  { %p473_p13 = scmp.ne.s32.totalorder %s592_s5, %s472_s27  ;;  %p476_p0 = scmp.lt.u32.totalorder %s472_s27, %s592_s5 }
 0x288   :  { %p478_p1 = pnand %p476_p0, %p473_p13 }
 0x28a   :  { %481 = shalt.err (!%p478_p1)
}
 0x28b   :  { %351 = dma.vmem_to_hbm [thread:$0]  %s349_s24, 32, %s592_s5, [#allocation4]  }
 0x28c   :  { %484 = dma.done.wait [#allocation4], 32  }
 0x28d   :  { %485 = vsyncadd [#allocation4], 4294967264 }
 0x28e   :  { %355 = vsyncpa [#allocation3], 1 }
 0x28f   :  { %356 = vsyncpa [#allocation4], 1 }

</bundles_post_ra>
